<compile_context>
chip_gen: v7x
topology: tpu7x:2x2x1
jax: 0.10.0
libtpu: 0.0.40
codegen_flags: <defaults>
</compile_context>

<pallas_src>
import math
import functools

import jax
import jax.numpy as jnp
from jax import lax
from jax.experimental import pallas as pl
from jax.experimental.pallas import tpu as pltpu


def _layernorm(x, gamma, beta, eps=1e-5):
    mean = jnp.mean(x, axis=-1, keepdims=True)
    var = jnp.mean((x - mean) ** 2, axis=-1, keepdims=True)
    return (x - mean) * lax.rsqrt(var + eps) * gamma + beta


def point_attention_kernel(num_heads, bb, nq, nk,
                           q_ref, k_ref, pen_ref,
                           wq_ref, wkv_ref, wd_ref, w1_ref, w2_ref,
                           vec_ref, bkv_ref, b1_ref,
                           out_ref, ctx_ref):
    C = wq_ref.shape[0]
    D = C // num_heads

    x_q = q_ref[...]                      # (bb*Nq, C)
    x_k = k_ref[...]                      # (bb*Nk, C)

    # Packed (1, C) vectors: bq(scaled), bd, g1, be1, b2, g2, be2.
    bq = vec_ref[0:1, :]
    bd = vec_ref[1:2, :]
    g1 = vec_ref[2:3, :]
    be1 = vec_ref[3:4, :]
    b2 = vec_ref[4:5, :]
    g2 = vec_ref[5:6, :]
    be2 = vec_ref[6:7, :]

    # Projections (wq / bq pre-scaled by 1/sqrt(D); K & V fused).
    q = jnp.dot(x_q, wq_ref[...], preferred_element_type=jnp.float32) + bq
    kv = jnp.dot(x_k, wkv_ref[...], preferred_element_type=jnp.float32) + bkv_ref[...]

    # TODO(synk): nn.Dropout layers are identity (eval mode); intentionally omitted.
    for b in range(bb):                   # static loop over local batch block
        qb = q[b * nq:(b + 1) * nq]       # (Nq, C)
        kvb = kv[b * nk:(b + 1) * nk]     # (Nk, 2C)
        pen = pen_ref[b]                  # (1, Nk), already includes 1/sqrt(D)
        for h in range(num_heads):        # static loop over heads
            kh = kvb[:, h * D:(h + 1) * D]
            vh = kvb[:, C + h * D:C + (h + 1) * D]
            # q @ k^T without materializing a transpose (contract feature axes).
            s = lax.dot_general(qb[:, h * D:(h + 1) * D], kh,
                                dimension_numbers=(((1,), (1,)), ((), ())),
                                preferred_element_type=jnp.float32)
            s = s - pen
            s = s - jnp.max(s, axis=-1, keepdims=True)
            e = jnp.exp(s)
            p = e * pl.reciprocal(jnp.sum(e, axis=-1, keepdims=True), approx=True)
            # Write this head's context straight into VMEM scratch (no concat).
            ctx_ref[b * nq:(b + 1) * nq, h * D:(h + 1) * D] = jnp.dot(
                p, vh, preferred_element_type=jnp.float32)

    ctx = ctx_ref[...]                    # (bb*Nq, C)
    attn_out = jnp.dot(ctx, wd_ref[...], preferred_element_type=jnp.float32) + bd
    y = _layernorm(attn_out + x_q, g1, be1)        # attention LayerNorm

    # Feed-forward block.
    h1 = jnp.maximum(
        jnp.dot(y, w1_ref[...], preferred_element_type=jnp.float32) + b1_ref[...], 0.0)
    z = jnp.dot(h1, w2_ref[...], preferred_element_type=jnp.float32) + b2
    out_ref[...] = _layernorm(z + y, g2, be2)      # output LayerNorm


_PARAM_ORDER = ("wq", "wkv", "wd", "w1", "w2", "vecs", "bkv", "b1")


def prepare_params(raw, num_heads):
    """One-time parameter transform (not in the per-call hot path):
       fold 1/sqrt(head_dim) into wq/bq, fuse K/V weights into (C, 2C),
       pack the (1, C) bias / LayerNorm vectors into one (8, C) operand."""
    C = raw["wq"].shape[0]
    D = C // num_heads
    inv = jnp.float32(1.0 / math.sqrt(D))
    vecs = jnp.concatenate([
        raw["bq"] * inv, raw["bd"], raw["g1"], raw["be1"],
        raw["b2"], raw["g2"], raw["be2"],
        jnp.zeros((1, C), jnp.float32),
    ], axis=0).astype(jnp.float32)
    return {
        "wq": (raw["wq"] * inv).astype(jnp.float32),
        "wkv": jnp.concatenate([raw["wk"], raw["wv"]], axis=1).astype(jnp.float32),
        "wd": raw["wd"],
        "w1": raw["w1"],
        "w2": raw["w2"],
        "vecs": vecs,
        "bkv": jnp.concatenate([raw["bk"], raw["bv"]], axis=1).astype(jnp.float32),
        "b1": raw["b1"],
    }


def _pick_batch_block(B):
    # Largest divisor of B that still leaves >= 2 grid steps: keeps both v7x
    # TensorCores busy while amortizing per-step overhead for larger B.
    # Pass batch_block=B explicitly to collapse the grid on single-TC v5e/v6e.
    if B < 2:
        return 1
    for bb in range(B // 2, 0, -1):
        if B % bb == 0:
            return bb
    return 1


def point_attention_layer(query_states, key_states, attn_mask, prepared, num_heads,
                          batch_block=None):
    """query_states: (B, Nq, C) f32; key_states: (B, Nk, C) f32; attn_mask: (B, Nk) bool."""
    B, Nq, C = query_states.shape
    _, Nk, _ = key_states.shape
    bb = _pick_batch_block(B) if batch_block is None else batch_block
    assert B % bb == 0
    nb = B // bb
    D = C // num_heads

    # Additive mask penalty with 1/sqrt(D) pre-folded:
    # softmax((scores - (~m)*1e10)/sqrt(D)) == softmax(q_scaled@k^T - penalty).
    penalty = jnp.where(attn_mask, 0.0, 1e10 / math.sqrt(D)).astype(jnp.float32)
    penalty = penalty.reshape(B, 1, Nk)

    # Flatten batch into rows (free reshape) so the kernel folds it into matmuls.
    q2 = query_states.reshape(B * Nq, C)
    k2 = key_states.reshape(B * Nk, C)

    plist = [prepared[name] for name in _PARAM_ORDER]

    def _full(a):
        zeros = (0,) * a.ndim
        return pl.BlockSpec(a.shape, lambda i, z=zeros: z)

    in_specs = [
        pl.BlockSpec((bb * Nq, C), lambda i: (i, 0)),      # query rows
        pl.BlockSpec((bb * Nk, C), lambda i: (i, 0)),      # key rows
        pl.BlockSpec((bb, 1, Nk), lambda i: (i, 0, 0)),    # penalty
    ] + [_full(p) for p in plist]

    out_spec = pl.BlockSpec((bb * Nq, C), lambda i: (i, 0))

    kernel = functools.partial(point_attention_kernel, num_heads, bb, Nq, Nk)

    out = pl.pallas_call(
        kernel,
        out_shape=jax.ShapeDtypeStruct((B * Nq, C), jnp.float32),
        grid=(nb,),
        in_specs=in_specs,
        out_specs=out_spec,
        scratch_shapes=[pltpu.VMEM((bb * Nq, C), jnp.float32)],
        compiler_params=pltpu.CompilerParams(
            dimension_semantics=("parallel",)),
    )(q2, k2, penalty, *plist)
    return out.reshape(B, Nq, C)


# ------------------------------ pure-JAX reference ------------------------------
def reference(query_states, key_states, attn_mask, params, num_heads):
    B, Nq, C = query_states.shape
    _, Nk, _ = key_states.shape
    D = C // num_heads

    def split(x):  # (B, N, C) -> (B, H, N, D)
        return x.reshape(B, -1, num_heads, D).transpose(0, 2, 1, 3)

    q = query_states @ params["wq"] + params["bq"]
    k = key_states @ params["wk"] + params["bk"]
    v = key_states @ params["wv"] + params["bv"]
    qh, kh, vh = split(q), split(k), split(v)
    scores = jnp.einsum("bhqd,bhkd->bhqk", qh, kh)
    penalty = ((~attn_mask).astype(jnp.float32) * 1e10)[:, None, None, :]
    scores = jax.nn.softmax((scores - penalty) / math.sqrt(D), axis=-1)
    ctx = jnp.einsum("bhqk,bhkd->bhqd", scores, vh)
    ctx = ctx.transpose(0, 2, 1, 3).reshape(B, Nq, C)
    attn_out = ctx @ params["wd"] + params["bd"]
    y = _layernorm(attn_out + query_states, params["g1"], params["be1"])
    h1 = jax.nn.relu(y @ params["w1"] + params["b1"])
    z = h1 @ params["w2"] + params["b2"]
    return _layernorm(z + y, params["g2"], params["be2"])


# ------------------------------------ main ------------------------------------
if __name__ == "__main__":
    B, Nq, Nk = 2, 16, 8          # Nq = N + M query points, Nk = N key points
    C, H, I = 32, 4, 64           # hidden_size, num_heads, intermediate_size

    key = jax.random.PRNGKey(0)
    ks = jax.random.split(key, 24)

    def w(k, shape, scale=0.05):
        return (scale * jax.random.normal(k, shape)).astype(jnp.float32)

    params = {
        "wq": w(ks[0], (C, C)),  "bq": w(ks[1], (1, C)),
        "wk": w(ks[2], (C, C)),  "bk": w(ks[3], (1, C)),
        "wv": w(ks[4], (C, C)),  "bv": w(ks[5], (1, C)),
        "wd": w(ks[6], (C, C)),  "bd": w(ks[7], (1, C)),
        "g1": (1.0 + 0.1 * jax.random.normal(ks[8], (1, C))).astype(jnp.float32),
        "be1": w(ks[9], (1, C), 0.1),
        "w1": w(ks[10], (C, I)), "b1": w(ks[11], (1, I)),
        "w2": w(ks[12], (I, C)), "b2": w(ks[13], (1, C)),
        "g2": (1.0 + 0.1 * jax.random.normal(ks[14], (1, C))).astype(jnp.float32),
        "be2": w(ks[15], (1, C), 0.1),
    }
    prepared = prepare_params(params, H)   # one-time transform

    query_states = jax.random.normal(ks[16], (B, Nq, C), dtype=jnp.float32)
    key_states = jax.random.normal(ks[17], (B, Nk, C), dtype=jnp.float32)
    # boolean attention mask over keys: mask out a few trailing keys per batch
    attn_mask = jnp.arange(Nk)[None, :] < jnp.array([[Nk], [Nk - 3]])  # (B, Nk) bool

    out = point_attention_layer(query_states, key_states, attn_mask, prepared, H)
    out = jax.block_until_ready(out)

    ref = reference(query_states, key_states, attn_mask, params, H)
    assert out.shape == (B, Nq, C)
    # tolerance loosened slightly from 1e-4 because the softmax denominator uses
    # the EUP approximate reciprocal (pl.reciprocal(approx=True)).
    assert jnp.allclose(out, ref, rtol=2e-3, atol=2e-3), \
        f"max abs err {jnp.max(jnp.abs(out - ref))}"

    print("KERNEL_OK")
</pallas_src>

<mosaic_0001>
module attributes {stable_mosaic.version = 11 : i64} {
  func.func @point_attention_kernel(%arg0: i32, %arg1: memref<16x32xf32, #tpu.memory_space<vmem>>, %arg2: memref<8x32xf32, #tpu.memory_space<vmem>>, %arg3: memref<1x1x8xf32, #tpu.memory_space<vmem>>, %arg4: memref<32x32xf32, #tpu.memory_space<vmem>>, %arg5: memref<32x64xf32, #tpu.memory_space<vmem>>, %arg6: memref<32x32xf32, #tpu.memory_space<vmem>>, %arg7: memref<32x64xf32, #tpu.memory_space<vmem>>, %arg8: memref<64x32xf32, #tpu.memory_space<vmem>>, %arg9: memref<8x32xf32, #tpu.memory_space<vmem>>, %arg10: memref<1x64xf32, #tpu.memory_space<vmem>>, %arg11: memref<1x64xf32, #tpu.memory_space<vmem>>, %arg12: memref<16x32xf32, #tpu.memory_space<vmem>>, %arg13: memref<16x32xf32, #tpu.memory_space<vmem>>) attributes {dimension_semantics = [#tpu.dimension_semantics<parallel>], iteration_bounds = array<i64: 2>, scalar_prefetch = 0 : i64, scratch_operands = 1 : i64, tpu.core_type = #tpu.core_type<tc>, window_params = [{transform_indices = @transform_0, window_bounds = array<i64: 16, 32>}, {transform_indices = @transform_1, window_bounds = array<i64: 8, 32>}, {transform_indices = @transform_2, window_bounds = array<i64: 1, 1, 8>}, {pipeline_mode = #tpu.pipeline_mode<synchronous>, transform_indices = @transform_3, window_bounds = array<i64: 32, 32>}, {pipeline_mode = #tpu.pipeline_mode<synchronous>, transform_indices = @transform_4, window_bounds = array<i64: 32, 64>}, {pipeline_mode = #tpu.pipeline_mode<synchronous>, transform_indices = @transform_5, window_bounds = array<i64: 32, 32>}, {pipeline_mode = #tpu.pipeline_mode<synchronous>, transform_indices = @transform_6, window_bounds = array<i64: 32, 64>}, {pipeline_mode = #tpu.pipeline_mode<synchronous>, transform_indices = @transform_7, window_bounds = array<i64: 64, 32>}, {pipeline_mode = #tpu.pipeline_mode<synchronous>, transform_indices = @transform_8, window_bounds = array<i64: 8, 32>}, {pipeline_mode = #tpu.pipeline_mode<synchronous>, transform_indices = @transform_9, window_bounds = array<i64: 1, 64>}, {pipeline_mode = #tpu.pipeline_mode<synchronous>, transform_indices = @transform_10, window_bounds = array<i64: 1, 64>}, {transform_indices = @transform_11, window_bounds = array<i64: 16, 32>}]} {
    %c0 = arith.constant 0 : index
    %c0_0 = arith.constant 0 : index
    %0 = vector.load %arg1[%c0, %c0_0] : memref<16x32xf32, #tpu.memory_space<vmem>>, vector<16x32xf32>
    %c0_1 = arith.constant 0 : index
    %c0_2 = arith.constant 0 : index
    %1 = vector.load %arg2[%c0_1, %c0_2] : memref<8x32xf32, #tpu.memory_space<vmem>>, vector<8x32xf32>
    %c0_3 = arith.constant 0 : index
    %c0_4 = arith.constant 0 : index
    %2 = vector.load %arg9[%c0_3, %c0_4] : memref<8x32xf32, #tpu.memory_space<vmem>>, vector<1x32xf32>
    %c1 = arith.constant 1 : index
    %c0_5 = arith.constant 0 : index
    %3 = vector.load %arg9[%c1, %c0_5] : memref<8x32xf32, #tpu.memory_space<vmem>>, vector<1x32xf32>
    %c2 = arith.constant 2 : index
    %c0_6 = arith.constant 0 : index
    %4 = vector.load %arg9[%c2, %c0_6] : memref<8x32xf32, #tpu.memory_space<vmem>>, vector<1x32xf32>
    %c3 = arith.constant 3 : index
    %c0_7 = arith.constant 0 : index
    %5 = vector.load %arg9[%c3, %c0_7] : memref<8x32xf32, #tpu.memory_space<vmem>>, vector<1x32xf32>
    %c4 = arith.constant 4 : index
    %c0_8 = arith.constant 0 : index
    %6 = vector.load %arg9[%c4, %c0_8] : memref<8x32xf32, #tpu.memory_space<vmem>>, vector<1x32xf32>
    %c5 = arith.constant 5 : index
    %c0_9 = arith.constant 0 : index
    %7 = vector.load %arg9[%c5, %c0_9] : memref<8x32xf32, #tpu.memory_space<vmem>>, vector<1x32xf32>
    %c6 = arith.constant 6 : index
    %c0_10 = arith.constant 0 : index
    %8 = vector.load %arg9[%c6, %c0_10] : memref<8x32xf32, #tpu.memory_space<vmem>>, vector<1x32xf32>
    %c0_11 = arith.constant 0 : index
    %c0_12 = arith.constant 0 : index
    %9 = vector.load %arg4[%c0_11, %c0_12] : memref<32x32xf32, #tpu.memory_space<vmem>>, vector<32x32xf32>
    %cst = arith.constant dense<0.000000e+00> : vector<16x32xf32>
    %10 = tpu.matmul %0, %9, %cst {dimension_numbers = #tpu.dot_dimension_numbers<[1], [0], [0], [1], [0, 0, 1, 1], [], []>} : vector<16x32xf32>, vector<32x32xf32>, vector<16x32xf32> -> vector<16x32xf32>
    %11 = vector.broadcast %2 : vector<1x32xf32> to vector<16x32xf32>
    %12 = arith.addf %10, %11 : vector<16x32xf32>
    %c0_13 = arith.constant 0 : index
    %c0_14 = arith.constant 0 : index
    %13 = vector.load %arg5[%c0_13, %c0_14] : memref<32x64xf32, #tpu.memory_space<vmem>>, vector<32x64xf32>
    %cst_15 = arith.constant dense<0.000000e+00> : vector<8x64xf32>
    %14 = tpu.matmul %1, %13, %cst_15 {dimension_numbers = #tpu.dot_dimension_numbers<[1], [0], [0], [1], [0, 0, 1, 1], [], []>} : vector<8x32xf32>, vector<32x64xf32>, vector<8x64xf32> -> vector<8x64xf32>
    %c0_16 = arith.constant 0 : index
    %c0_17 = arith.constant 0 : index
    %15 = vector.load %arg10[%c0_16, %c0_17] : memref<1x64xf32, #tpu.memory_space<vmem>>, vector<1x64xf32>
    %16 = vector.broadcast %15 : vector<1x64xf32> to vector<8x64xf32>
    %17 = arith.addf %14, %16 : vector<8x64xf32>
    %c0_18 = arith.constant 0 : index
    %c0_19 = arith.constant 0 : index
    %c0_20 = arith.constant 0 : index
    %18 = vector.load %arg3[%c0_18, %c0_19, %c0_20] : memref<1x1x8xf32, #tpu.memory_space<vmem>>, vector<1x1x8xf32>
    %19 = vector.shape_cast %18 : vector<1x1x8xf32> to vector<1x8xf32>
    %20 = vector.extract_strided_slice %17 {offsets = [0, 0], sizes = [8, 8], strides = [1, 1]} : vector<8x64xf32> to vector<8x8xf32>
    %21 = vector.extract_strided_slice %17 {offsets = [0, 32], sizes = [8, 8], strides = [1, 1]} : vector<8x64xf32> to vector<8x8xf32>
    %22 = vector.extract_strided_slice %12 {offsets = [0, 0], sizes = [16, 8], strides = [1, 1]} : vector<16x32xf32> to vector<16x8xf32>
    %cst_21 = arith.constant dense<0.000000e+00> : vector<16x8xf32>
    %23 = tpu.matmul %22, %20, %cst_21 {dimension_numbers = #tpu.dot_dimension_numbers<[1], [1], [0], [0], [0, 0, 1, 0], [], []>} : vector<16x8xf32>, vector<8x8xf32>, vector<16x8xf32> -> vector<16x8xf32>
    %24 = vector.broadcast %19 : vector<1x8xf32> to vector<16x8xf32>
    %25 = arith.subf %23, %24 : vector<16x8xf32>
    %cst_22 = arith.constant dense<0xFF800000> : vector<16xf32>
    %26 = vector.multi_reduction <maximumf>, %25, %cst_22 [1] : vector<16x8xf32> to vector<16xf32>
    %27 = vector.shape_cast %26 : vector<16xf32> to vector<16x1xf32>
    %28 = vector.broadcast %27 : vector<16x1xf32> to vector<16x8xf32>
    %29 = arith.subf %25, %28 : vector<16x8xf32>
    %30 = math.exp %29 : vector<16x8xf32>
    %cst_23 = arith.constant dense<0.000000e+00> : vector<16xf32>
    %31 = vector.multi_reduction <add>, %30, %cst_23 [1] : vector<16x8xf32> to vector<16xf32>
    %32 = vector.shape_cast %31 : vector<16xf32> to vector<16x1xf32>
    %33 = tpu.reciprocal %32 {approx = true} : vector<16x1xf32> -> vector<16x1xf32>
    %34 = vector.broadcast %33 : vector<16x1xf32> to vector<16x8xf32>
    %35 = arith.mulf %30, %34 : vector<16x8xf32>
    %cst_24 = arith.constant dense<0.000000e+00> : vector<16x8xf32>
    %36 = tpu.matmul %35, %21, %cst_24 {dimension_numbers = #tpu.dot_dimension_numbers<[1], [0], [0], [1], [0, 0, 1, 1], [], []>} : vector<16x8xf32>, vector<8x8xf32>, vector<16x8xf32> -> vector<16x8xf32>
    %c0_25 = arith.constant 0 : index
    %c0_26 = arith.constant 0 : index
    %37 = vector.load %arg13[%c0_25, %c0_26] : memref<16x32xf32, #tpu.memory_space<vmem>>, vector<16x8xf32>
    tpu.vector_store %arg13[%c0_25, %c0_26], %36 {strides = array<i32>} : memref<16x32xf32, #tpu.memory_space<vmem>>, vector<16x8xf32>,
    %38 = vector.extract_strided_slice %17 {offsets = [0, 8], sizes = [8, 8], strides = [1, 1]} : vector<8x64xf32> to vector<8x8xf32>
    %39 = vector.extract_strided_slice %17 {offsets = [0, 40], sizes = [8, 8], strides = [1, 1]} : vector<8x64xf32> to vector<8x8xf32>
    %40 = vector.extract_strided_slice %12 {offsets = [0, 8], sizes = [16, 8], strides = [1, 1]} : vector<16x32xf32> to vector<16x8xf32>
    %cst_27 = arith.constant dense<0.000000e+00> : vector<16x8xf32>
    %41 = tpu.matmul %40, %38, %cst_27 {dimension_numbers = #tpu.dot_dimension_numbers<[1], [1], [0], [0], [0, 0, 1, 0], [], []>} : vector<16x8xf32>, vector<8x8xf32>, vector<16x8xf32> -> vector<16x8xf32>
    %42 = vector.broadcast %19 : vector<1x8xf32> to vector<16x8xf32>
    %43 = arith.subf %41, %42 : vector<16x8xf32>
    %cst_28 = arith.constant dense<0xFF800000> : vector<16xf32>
    %44 = vector.multi_reduction <maximumf>, %43, %cst_28 [1] : vector<16x8xf32> to vector<16xf32>
    %45 = vector.shape_cast %44 : vector<16xf32> to vector<16x1xf32>
    %46 = vector.broadcast %45 : vector<16x1xf32> to vector<16x8xf32>
    %47 = arith.subf %43, %46 : vector<16x8xf32>
    %48 = math.exp %47 : vector<16x8xf32>
    %cst_29 = arith.constant dense<0.000000e+00> : vector<16xf32>
    %49 = vector.multi_reduction <add>, %48, %cst_29 [1] : vector<16x8xf32> to vector<16xf32>
    %50 = vector.shape_cast %49 : vector<16xf32> to vector<16x1xf32>
    %51 = tpu.reciprocal %50 {approx = true} : vector<16x1xf32> -> vector<16x1xf32>
    %52 = vector.broadcast %51 : vector<16x1xf32> to vector<16x8xf32>
    %53 = arith.mulf %48, %52 : vector<16x8xf32>
    %cst_30 = arith.constant dense<0.000000e+00> : vector<16x8xf32>
    %54 = tpu.matmul %53, %39, %cst_30 {dimension_numbers = #tpu.dot_dimension_numbers<[1], [0], [0], [1], [0, 0, 1, 1], [], []>} : vector<16x8xf32>, vector<8x8xf32>, vector<16x8xf32> -> vector<16x8xf32>
    %c0_31 = arith.constant 0 : index
    %c8 = arith.constant 8 : index
    %55 = vector.load %arg13[%c0_31, %c8] : memref<16x32xf32, #tpu.memory_space<vmem>>, vector<16x8xf32>
    tpu.vector_store %arg13[%c0_31, %c8], %54 {strides = array<i32>} : memref<16x32xf32, #tpu.memory_space<vmem>>, vector<16x8xf32>,
    %56 = vector.extract_strided_slice %17 {offsets = [0, 16], sizes = [8, 8], strides = [1, 1]} : vector<8x64xf32> to vector<8x8xf32>
    %57 = vector.extract_strided_slice %17 {offsets = [0, 48], sizes = [8, 8], strides = [1, 1]} : vector<8x64xf32> to vector<8x8xf32>
    %58 = vector.extract_strided_slice %12 {offsets = [0, 16], sizes = [16, 8], strides = [1, 1]} : vector<16x32xf32> to vector<16x8xf32>
    %cst_32 = arith.constant dense<0.000000e+00> : vector<16x8xf32>
    %59 = tpu.matmul %58, %56, %cst_32 {dimension_numbers = #tpu.dot_dimension_numbers<[1], [1], [0], [0], [0, 0, 1, 0], [], []>} : vector<16x8xf32>, vector<8x8xf32>, vector<16x8xf32> -> vector<16x8xf32>
    %60 = vector.broadcast %19 : vector<1x8xf32> to vector<16x8xf32>
    %61 = arith.subf %59, %60 : vector<16x8xf32>
    %cst_33 = arith.constant dense<0xFF800000> : vector<16xf32>
    %62 = vector.multi_reduction <maximumf>, %61, %cst_33 [1] : vector<16x8xf32> to vector<16xf32>
    %63 = vector.shape_cast %62 : vector<16xf32> to vector<16x1xf32>
    %64 = vector.broadcast %63 : vector<16x1xf32> to vector<16x8xf32>
    %65 = arith.subf %61, %64 : vector<16x8xf32>
    %66 = math.exp %65 : vector<16x8xf32>
    %cst_34 = arith.constant dense<0.000000e+00> : vector<16xf32>
    %67 = vector.multi_reduction <add>, %66, %cst_34 [1] : vector<16x8xf32> to vector<16xf32>
    %68 = vector.shape_cast %67 : vector<16xf32> to vector<16x1xf32>
    %69 = tpu.reciprocal %68 {approx = true} : vector<16x1xf32> -> vector<16x1xf32>
    %70 = vector.broadcast %69 : vector<16x1xf32> to vector<16x8xf32>
    %71 = arith.mulf %66, %70 : vector<16x8xf32>
    %cst_35 = arith.constant dense<0.000000e+00> : vector<16x8xf32>
    %72 = tpu.matmul %71, %57, %cst_35 {dimension_numbers = #tpu.dot_dimension_numbers<[1], [0], [0], [1], [0, 0, 1, 1], [], []>} : vector<16x8xf32>, vector<8x8xf32>, vector<16x8xf32> -> vector<16x8xf32>
    %c0_36 = arith.constant 0 : index
    %c16 = arith.constant 16 : index
    %73 = vector.load %arg13[%c0_36, %c16] : memref<16x32xf32, #tpu.memory_space<vmem>>, vector<16x8xf32>
    tpu.vector_store %arg13[%c0_36, %c16], %72 {strides = array<i32>} : memref<16x32xf32, #tpu.memory_space<vmem>>, vector<16x8xf32>,
    %74 = vector.extract_strided_slice %17 {offsets = [0, 24], sizes = [8, 8], strides = [1, 1]} : vector<8x64xf32> to vector<8x8xf32>
    %75 = vector.extract_strided_slice %17 {offsets = [0, 56], sizes = [8, 8], strides = [1, 1]} : vector<8x64xf32> to vector<8x8xf32>
    %76 = vector.extract_strided_slice %12 {offsets = [0, 24], sizes = [16, 8], strides = [1, 1]} : vector<16x32xf32> to vector<16x8xf32>
    %cst_37 = arith.constant dense<0.000000e+00> : vector<16x8xf32>
    %77 = tpu.matmul %76, %74, %cst_37 {dimension_numbers = #tpu.dot_dimension_numbers<[1], [1], [0], [0], [0, 0, 1, 0], [], []>} : vector<16x8xf32>, vector<8x8xf32>, vector<16x8xf32> -> vector<16x8xf32>
    %78 = vector.broadcast %19 : vector<1x8xf32> to vector<16x8xf32>
    %79 = arith.subf %77, %78 : vector<16x8xf32>
    %cst_38 = arith.constant dense<0xFF800000> : vector<16xf32>
    %80 = vector.multi_reduction <maximumf>, %79, %cst_38 [1] : vector<16x8xf32> to vector<16xf32>
    %81 = vector.shape_cast %80 : vector<16xf32> to vector<16x1xf32>
    %82 = vector.broadcast %81 : vector<16x1xf32> to vector<16x8xf32>
    %83 = arith.subf %79, %82 : vector<16x8xf32>
    %84 = math.exp %83 : vector<16x8xf32>
    %cst_39 = arith.constant dense<0.000000e+00> : vector<16xf32>
    %85 = vector.multi_reduction <add>, %84, %cst_39 [1] : vector<16x8xf32> to vector<16xf32>
    %86 = vector.shape_cast %85 : vector<16xf32> to vector<16x1xf32>
    %87 = tpu.reciprocal %86 {approx = true} : vector<16x1xf32> -> vector<16x1xf32>
    %88 = vector.broadcast %87 : vector<16x1xf32> to vector<16x8xf32>
    %89 = arith.mulf %84, %88 : vector<16x8xf32>
    %cst_40 = arith.constant dense<0.000000e+00> : vector<16x8xf32>
    %90 = tpu.matmul %89, %75, %cst_40 {dimension_numbers = #tpu.dot_dimension_numbers<[1], [0], [0], [1], [0, 0, 1, 1], [], []>} : vector<16x8xf32>, vector<8x8xf32>, vector<16x8xf32> -> vector<16x8xf32>
    %c0_41 = arith.constant 0 : index
    %c24 = arith.constant 24 : index
    %91 = vector.load %arg13[%c0_41, %c24] : memref<16x32xf32, #tpu.memory_space<vmem>>, vector<16x8xf32>
    tpu.vector_store %arg13[%c0_41, %c24], %90 {strides = array<i32>} : memref<16x32xf32, #tpu.memory_space<vmem>>, vector<16x8xf32>,
    %c0_42 = arith.constant 0 : index
    %c0_43 = arith.constant 0 : index
    %92 = vector.load %arg13[%c0_42, %c0_43] : memref<16x32xf32, #tpu.memory_space<vmem>>, vector<16x32xf32>
    %c0_44 = arith.constant 0 : index
    %c0_45 = arith.constant 0 : index
    %93 = vector.load %arg6[%c0_44, %c0_45] : memref<32x32xf32, #tpu.memory_space<vmem>>, vector<32x32xf32>
    %cst_46 = arith.constant dense<0.000000e+00> : vector<16x32xf32>
    %94 = tpu.matmul %92, %93, %cst_46 {dimension_numbers = #tpu.dot_dimension_numbers<[1], [0], [0], [1], [0, 0, 1, 1], [], []>} : vector<16x32xf32>, vector<32x32xf32>, vector<16x32xf32> -> vector<16x32xf32>
    %95 = vector.broadcast %3 : vector<1x32xf32> to vector<16x32xf32>
    %96 = arith.addf %94, %95 : vector<16x32xf32>
    %97 = arith.addf %96, %0 : vector<16x32xf32>
    %cst_47 = arith.constant dense<0.000000e+00> : vector<16xf32>
    %98 = vector.multi_reduction <add>, %97, %cst_47 [1] : vector<16x32xf32> to vector<16xf32>
    %99 = vector.shape_cast %98 : vector<16xf32> to vector<16x1xf32>
    %cst_48 = arith.constant 3.200000e+01 : f32
    %100 = vector.broadcast %cst_48 : f32 to vector<16x1xf32>
    %101 = arith.divf %99, %100 : vector<16x1xf32>
    %102 = vector.broadcast %101 : vector<16x1xf32> to vector<16x32xf32>
    %103 = arith.subf %97, %102 : vector<16x32xf32>
    %104 = arith.mulf %103, %103 : vector<16x32xf32>
    %cst_49 = arith.constant dense<0.000000e+00> : vector<16xf32>
    %105 = vector.multi_reduction <add>, %104, %cst_49 [1] : vector<16x32xf32> to vector<16xf32>
    %106 = vector.shape_cast %105 : vector<16xf32> to vector<16x1xf32>
    %cst_50 = arith.constant 3.200000e+01 : f32
    %107 = vector.broadcast %cst_50 : f32 to vector<16x1xf32>
    %108 = arith.divf %106, %107 : vector<16x1xf32>
    %109 = vector.broadcast %101 : vector<16x1xf32> to vector<16x32xf32>
    %110 = arith.subf %97, %109 : vector<16x32xf32>
    %cst_51 = arith.constant 9.99999974E-6 : f32
    %111 = vector.broadcast %cst_51 : f32 to vector<16x1xf32>
    %112 = arith.addf %108, %111 : vector<16x1xf32>
    %113 = math.rsqrt %112 : vector<16x1xf32>
    %114 = vector.broadcast %113 : vector<16x1xf32> to vector<16x32xf32>
    %115 = arith.mulf %110, %114 : vector<16x32xf32>
    %116 = vector.broadcast %4 : vector<1x32xf32> to vector<16x32xf32>
    %117 = arith.mulf %115, %116 : vector<16x32xf32>
    %118 = vector.broadcast %5 : vector<1x32xf32> to vector<16x32xf32>
    %119 = arith.addf %117, %118 : vector<16x32xf32>
    %c0_52 = arith.constant 0 : index
    %c0_53 = arith.constant 0 : index
    %120 = vector.load %arg7[%c0_52, %c0_53] : memref<32x64xf32, #tpu.memory_space<vmem>>, vector<32x64xf32>
    %cst_54 = arith.constant dense<0.000000e+00> : vector<16x64xf32>
    %121 = tpu.matmul %119, %120, %cst_54 {dimension_numbers = #tpu.dot_dimension_numbers<[1], [0], [0], [1], [0, 0, 1, 1], [], []>} : vector<16x32xf32>, vector<32x64xf32>, vector<16x64xf32> -> vector<16x64xf32>
    %c0_55 = arith.constant 0 : index
    %c0_56 = arith.constant 0 : index
    %122 = vector.load %arg11[%c0_55, %c0_56] : memref<1x64xf32, #tpu.memory_space<vmem>>, vector<1x64xf32>
    %123 = vector.broadcast %122 : vector<1x64xf32> to vector<16x64xf32>
    %124 = arith.addf %121, %123 : vector<16x64xf32>
    %cst_57 = arith.constant 0.000000e+00 : f32
    %125 = vector.broadcast %cst_57 : f32 to vector<16x64xf32>
    %126 = arith.maximumf %124, %125 : vector<16x64xf32>
    %c0_58 = arith.constant 0 : index
    %c0_59 = arith.constant 0 : index
    %127 = vector.load %arg8[%c0_58, %c0_59] : memref<64x32xf32, #tpu.memory_space<vmem>>, vector<64x32xf32>
    %cst_60 = arith.constant dense<0.000000e+00> : vector<16x32xf32>
    %128 = tpu.matmul %126, %127, %cst_60 {dimension_numbers = #tpu.dot_dimension_numbers<[1], [0], [0], [1], [0, 0, 1, 1], [], []>} : vector<16x64xf32>, vector<64x32xf32>, vector<16x32xf32> -> vector<16x32xf32>
    %129 = vector.broadcast %6 : vector<1x32xf32> to vector<16x32xf32>
    %130 = arith.addf %128, %129 : vector<16x32xf32>
    %131 = arith.addf %130, %119 : vector<16x32xf32>
    %cst_61 = arith.constant dense<0.000000e+00> : vector<16xf32>
    %132 = vector.multi_reduction <add>, %131, %cst_61 [1] : vector<16x32xf32> to vector<16xf32>
    %133 = vector.shape_cast %132 : vector<16xf32> to vector<16x1xf32>
    %cst_62 = arith.constant 3.200000e+01 : f32
    %134 = vector.broadcast %cst_62 : f32 to vector<16x1xf32>
    %135 = arith.divf %133, %134 : vector<16x1xf32>
    %136 = vector.broadcast %135 : vector<16x1xf32> to vector<16x32xf32>
    %137 = arith.subf %131, %136 : vector<16x32xf32>
    %138 = arith.mulf %137, %137 : vector<16x32xf32>
    %cst_63 = arith.constant dense<0.000000e+00> : vector<16xf32>
    %139 = vector.multi_reduction <add>, %138, %cst_63 [1] : vector<16x32xf32> to vector<16xf32>
    %140 = vector.shape_cast %139 : vector<16xf32> to vector<16x1xf32>
    %cst_64 = arith.constant 3.200000e+01 : f32
    %141 = vector.broadcast %cst_64 : f32 to vector<16x1xf32>
    %142 = arith.divf %140, %141 : vector<16x1xf32>
    %143 = vector.broadcast %135 : vector<16x1xf32> to vector<16x32xf32>
    %144 = arith.subf %131, %143 : vector<16x32xf32>
    %cst_65 = arith.constant 9.99999974E-6 : f32
    %145 = vector.broadcast %cst_65 : f32 to vector<16x1xf32>
    %146 = arith.addf %142, %145 : vector<16x1xf32>
    %147 = math.rsqrt %146 : vector<16x1xf32>
    %148 = vector.broadcast %147 : vector<16x1xf32> to vector<16x32xf32>
    %149 = arith.mulf %144, %148 : vector<16x32xf32>
    %150 = vector.broadcast %7 : vector<1x32xf32> to vector<16x32xf32>
    %151 = arith.mulf %149, %150 : vector<16x32xf32>
    %152 = vector.broadcast %8 : vector<1x32xf32> to vector<16x32xf32>
    %153 = arith.addf %151, %152 : vector<16x32xf32>
    %c0_66 = arith.constant 0 : index
    %c0_67 = arith.constant 0 : index
    %154 = vector.load %arg12[%c0_66, %c0_67] : memref<16x32xf32, #tpu.memory_space<vmem>>, vector<16x32xf32>
    tpu.vector_store %arg12[%c0_66, %c0_67], %153 {strides = array<i32>} : memref<16x32xf32, #tpu.memory_space<vmem>>, vector<16x32xf32>,
    return
  }
  func.func @transform_0(%arg0: i32) -> (i32, i32) {
    %c0_i32 = arith.constant 0 : i32
    %c0_i32_0 = arith.constant 0 : i32
    return %arg0, %c0_i32 : i32, i32
  }
  func.func @transform_1(%arg0: i32) -> (i32, i32) {
    %c0_i32 = arith.constant 0 : i32
    %c0_i32_0 = arith.constant 0 : i32
    return %arg0, %c0_i32 : i32, i32
  }
  func.func @transform_2(%arg0: i32) -> (i32, i32, i32) {
    %c0_i32 = arith.constant 0 : i32
    %c0_i32_0 = arith.constant 0 : i32
    %c0_i32_1 = arith.constant 0 : i32
    return %arg0, %c0_i32, %c0_i32_0 : i32, i32, i32
  }
  func.func @transform_3(%arg0: i32) -> (i32, i32) {
    %c0_i32 = arith.constant 0 : i32
    %c0_i32_0 = arith.constant 0 : i32
    %c0_i32_1 = arith.constant 0 : i32
    return %c0_i32, %c0_i32_0 : i32, i32
  }
  func.func @transform_4(%arg0: i32) -> (i32, i32) {
    %c0_i32 = arith.constant 0 : i32
    %c0_i32_0 = arith.constant 0 : i32
    %c0_i32_1 = arith.constant 0 : i32
    return %c0_i32, %c0_i32_0 : i32, i32
  }
  func.func @transform_5(%arg0: i32) -> (i32, i32) {
    %c0_i32 = arith.constant 0 : i32
    %c0_i32_0 = arith.constant 0 : i32
    %c0_i32_1 = arith.constant 0 : i32
    return %c0_i32, %c0_i32_0 : i32, i32
  }
  func.func @transform_6(%arg0: i32) -> (i32, i32) {
    %c0_i32 = arith.constant 0 : i32
    %c0_i32_0 = arith.constant 0 : i32
    %c0_i32_1 = arith.constant 0 : i32
    return %c0_i32, %c0_i32_0 : i32, i32
  }
  func.func @transform_7(%arg0: i32) -> (i32, i32) {
    %c0_i32 = arith.constant 0 : i32
    %c0_i32_0 = arith.constant 0 : i32
    %c0_i32_1 = arith.constant 0 : i32
    return %c0_i32, %c0_i32_0 : i32, i32
  }
  func.func @transform_8(%arg0: i32) -> (i32, i32) {
    %c0_i32 = arith.constant 0 : i32
    %c0_i32_0 = arith.constant 0 : i32
    %c0_i32_1 = arith.constant 0 : i32
    return %c0_i32, %c0_i32_0 : i32, i32
  }
  func.func @transform_9(%arg0: i32) -> (i32, i32) {
    %c0_i32 = arith.constant 0 : i32
    %c0_i32_0 = arith.constant 0 : i32
    %c0_i32_1 = arith.constant 0 : i32
    return %c0_i32, %c0_i32_0 : i32, i32
  }
  func.func @transform_10(%arg0: i32) -> (i32, i32) {
    %c0_i32 = arith.constant 0 : i32
    %c0_i32_0 = arith.constant 0 : i32
    %c0_i32_1 = arith.constant 0 : i32
    return %c0_i32, %c0_i32_0 : i32, i32
  }
  func.func @transform_11(%arg0: i32) -> (i32, i32) {
    %c0_i32 = arith.constant 0 : i32
    %c0_i32_0 = arith.constant 0 : i32
    return %arg0, %c0_i32 : i32, i32
  }
}

</mosaic_0001>

<bundles_post_ra>
// kernel: tpu_custom_call.1
= control target key start
LH: loop header
LB: loop body
LE: loop exit
PB: predicated region body
PF: predicated region fallthrough
CT: control target
= control target key end

     0   :  { %s2991_s0 = inlined_call_operand.vmem [shape: f32[32,32], index: 0, kind: input, shape index: {}]   ;;  %s2992_s1 = inlined_call_operand.hbm [shape: f32[16,32], index: 1, kind: input, shape index: {}]   ;;  %s2993_s2 = inlined_call_operand.vmem [shape: f32[2,1,8], index: 2, kind: input, shape index: {}]   ;;  %s2994_s3 = inlined_call_operand.vmem [shape: f32[32,32], index: 3, kind: input, shape index: {}]   ;;  %s2995_s4 = inlined_call_operand.vmem [shape: f32[32,64], index: 4, kind: input, shape index: {}]   ;;  %s2996_s5 = inlined_call_operand.hbm [shape: f32[32,32], index: 5, kind: input, shape index: {}]   ;;  %s2997_s6 = inlined_call_operand.hbm [shape: f32[32,64], index: 6, kind: input, shape index: {}]   ;;  %s2998_s7 = inlined_call_operand.vmem [shape: f32[64,32], index: 7, kind: input, shape index: {}]   ;;  %s2999_s8 = inlined_call_operand.vmem [shape: f32[8,32], index: 8, kind: input, shape index: {}]   ;;  %s3000_s9 = inlined_call_operand.vmem [shape: f32[1,64], index: 9, kind: input, shape index: {}]   ;;  %s3001_s10 = inlined_call_operand.vmem [shape: f32[1,64], index: 10, kind: input, shape index: {}]   ;;  %s3002_s11 = inlined_call_operand.hbm [shape: f32[32,32], index: 11, kind: output, shape index: {}]  }
   0x1   :  { %3009 = sst [smem:[#allocation15_spill]] %s2992_s1 }
   0x2   :  { %3010 = sst [smem:[#allocation16_spill]] %s3002_s11 }
   0x3   :  { %16 = vsyncpa [#allocation4], 0 }
   0x4   :  { %18 = vsyncpa [#allocation4 + $0x1], 0 }
   0x5   :  { %19 = vsyncpa [#allocation7], 0 }
   0x6   :  { %20 = vsyncpa [#allocation5], 0 }
   0x7   :  { %22 = vsyncpa [#allocation5 + $0x1], 0  ;;  %s2587_s17 = smov 0   ;;  %s2589_s18 = smov 0  }
   0x8   :  { %s2591_s19 = smov 0   ;;  %s2593_s20 = smov 0  }
   0x9 LB: > { %3011 = sst [smem:[#allocation13_spill]] %s2493_s17  ;;  %s2608_s21 = sadd.s32 4294967295, %s2505_s20   ;;  %s2505_s20 = sphi %s2593_s20, %s3033_s20   ;;  %s2501_s19 = sphi %s2591_s19, %s3032_s19   ;;  %s2497_s18 = sphi %s2589_s18, %s3031_s18   ;;  %s2493_s17 = sphi %s2587_s17, %s3030_s17  }
   0xa   : > { %s1961_s22 = sadd.s32 4294967294, %s2505_s20   ;;  %p74_p0 = scmp.ne.s32.totalorder %s2497_s18, %s2493_s17 }
   0xb   : > { %p3003_p1 = scmp.eq.s32.totalorder %s2608_s21, 0  ;;  %p298_p3 = scmp.eq.s32.totalorder %s1961_s22, 1 }
   0xc   : > { %p1962_p5 = scmp.ge.s32.totalorder %s2505_s20, 1  ;;  %p305_p7 = scmp.lt.s32.totalorder %s2505_s20, 3 }
   0xd   : > { %p2617_p4 = por %p3003_p1, %p74_p0  ;;  %p2622_p6 = por %p298_p3, %p74_p0 }
   0xe   : > { %p2627_p8 = pnand %p1962_p5, %p305_p7  ;;  %s2507_s26 = smov [#allocation6]  }
   0xf   : > { %s3012_s23 = scalar_select %p2617_p4, 1, 0 }
  0x10   : > { %s3013_s24 = scalar_select %p2622_p6, 1, 0 }
  0x11   : > { %s323_s27 = sshll.u32 %s2507_s26, 4  ;;  %p2238_p9 = pneg %p2627_p8  ;;  %s2631_s27 = int_to_ptr.vmem [resolvable:$true] %s323_s27 }
  0x12   : > { %3014 = sst [smem:[#allocation14_spill]] %s3013_s24  ;;  %s2508_s29 = smov [#allocation8]  }
  0x13   : > { %p2638_p11 = pnand %p2238_p9, %p3003_p1  ;;  %s336_s30 = sshll.u32 %s2508_s29, 4  ;;  %s2642_s30 = int_to_ptr.vmem [resolvable:$true] %s336_s30 }
  0x14   : > { %s2349_s14 = scalar_lea.hbm %s2996_s5, 512 }
  0x15   : > { %p2350_p12 = scmp.ne.s32.totalorder %s2996_s5, %s2349_s14  ;;  %p2351_p13 = pneg %p2638_p11 }
  0x16   : > { %p2356_p5 = scmp.lt.u32.totalorder %s2349_s14, %s2996_s5 }
  0x17   : > { %p2352_p0 = pnand %p2351_p13, %p2350_p12 }
  0x19   : > { %p2353_p3 = pneg %p2352_p0 }
  0x1b   : > { %p2358_p7 = pnand %p2356_p5, %p2353_p3 }
  0x1d   : > { %2361 = shalt.err (!%p2358_p7)
}
  0x1e   : > { %s2362_s29 = scalar_lea.vmem %s2631_s27, 512  ;;  %p2370_p2 = scmp.lt.s32.totalorder %s2631_s27, %s2631_s27 }
  0x1f   : > { %p2363_p9 = scmp.ne.s32.totalorder %s2631_s27, %s2362_s29  ;;  %p2371_p12 = scmp.lt.s32.totalorder %s2362_s29, %s2362_s29 }
  0x21   : > { %p2365_p10 = pnand %p2363_p9, %p2351_p13  ;;  %p2372_p0 = por %p2371_p12, %p2370_p2 }
  0x23   : > { %p2366_p1 = pneg %p2365_p10 }
  0x25   : > { %p2373_p6 = pnand %p2372_p0, %p2366_p1 }
  0x27   : > { %2376 = shalt.err (!%p2373_p6)
}
  0x28   : > { %s2509_s12 = smov 128   ;;  %s2510_s13 = smov 8  }
  0x29   : > { %2241 = dma.hbm_to_vmem [thread:$0]  (!%p2638_p11), %s2996_s5, 512, %s2631_s27, [#allocation7], %s2509_s12, %s2509_s12, %s2510_s13  }
  0x2a   : > { %s2377_s26 = scalar_lea.hbm %s2997_s6, 512 }
  0x2b   : > { %p2378_p2 = scmp.ne.s32.totalorder %s2997_s6, %s2377_s26  ;;  %p2384_p10 = scmp.lt.u32.totalorder %s2377_s26, %s2997_s6 }
  0x2d   : > { %p2380_p1 = pnand %p2378_p2, %p2351_p13 }
  0x2f   : > { %p2381_p6 = pneg %p2380_p1 }
  0x31   : > { %p2386_p3 = pnand %p2384_p10, %p2381_p6 }
  0x33   : > { %2389 = shalt.err (!%p2386_p3)
}
  0x34   : > { %s2390_s27 = scalar_lea.vmem %s2642_s30, 512  ;;  %p2398_p12 = scmp.lt.s32.totalorder %s2642_s30, %s2642_s30 }
  0x35   : > { %p2391_p5 = scmp.ne.s32.totalorder %s2642_s30, %s2390_s27  ;;  %p2399_p0 = scmp.lt.s32.totalorder %s2390_s27, %s2390_s27 }
  0x37   : > { %p2393_p7 = pnand %p2391_p5, %p2351_p13  ;;  %p2400_p2 = por %p2399_p0, %p2398_p12 }
  0x39   : > { %p2394_p9 = pneg %p2393_p7 }
  0x3b   : > { %p2401_p1 = pnand %p2400_p2, %p2394_p9 }
  0x3d   : > { %2404 = shalt.err (!%p2401_p1)
}
  0x3e   : > { %2244 = dma.hbm_to_vmem [thread:$0]  (!%p2638_p11), %s2997_s6, 512, %s2642_s30, [#allocation7], %s2509_s12, %s2509_s12, %s2510_s13  }
  0x3f   : > { %s2697_s24 = sadd.s32 1, %s2505_s20   ;;  %s61_s28 = sadd.s32 1, %s2501_s19 }
  0x40   : > { %s58_s14 = ssub.s32 %s2505_s20, %s2697_s24  ;;  %p68_p13 = scmp.ne.s32.totalorder %s2501_s19, %s2497_s18 }
  0x41   : > { %p59_p6 = scmp.eq.s32.totalorder %s58_s14, 0  ;;  %p69_p10 = scmp.eq.s32.totalorder %s2505_s20, 0 }
  0x42   : > { %p3017_p3 = scmp.eq.s32.totalorder %s2608_s21, 1  ;;  %p2255_p7 = scmp.lt.s32.totalorder %s2505_s20, 2 }
  0x43   : > { %s2713_s16 = scalar_select %p59_p6, %s2501_s19, %s61_s28  }
  0x44   : > { %p2707_p5 = por %p3017_p3, %p68_p13  ;;  %p70_p9 = por %p69_p10, %p68_p13 }
  0x45   : > { %s371_s22 = sand.u32 1, %s2501_s19   ;;  %s1967_s30 = sshll.u32 %s2505_s20, 7 }
  0x46   : > { %s3018_s15 = scalar_select %p2707_p5, 1, 0 }
  0x47   : > { %s1966_s26 = sshll.u32 %s371_s22, 3  ;;  %s3019_s1 = sld [smem:[#allocation15_spill]] }
  0x48   : > { %s375_s27 = scalar_lea.vmem [#allocation3], %s1966_s26  ;;  %p2724_p11 = pnand %p2255_p7, %p70_p9 }
  0x49   : > { %s382_s11 = sshll.u32 %s375_s27, 4  ;;  %s372_s28 = scalar_lea.sflag [#allocation4], %s371_s22  ;;  %s2722_s11 = int_to_ptr.vmem [resolvable:$true] %s382_s11 }
  0x4a   : > { %p2407_p0 = pneg %p2724_p11 }
  0x4d   : > { %s2720_s29 = scalar_lea.hbm %s3019_s1, %s1967_s30  ;;  %s2410_s12 = scalar_lea.hbm %s3019_s1, 256 }
  0x4e   : > { %s2405_s14 = scalar_lea.hbm %s2720_s29, 128  ;;  %p2411_p13 = scmp.lt.u32.totalorder %s2720_s29, %s3019_s1 }
  0x4f   : > { %p2406_p12 = scmp.ne.s32.totalorder %s2720_s29, %s2405_s14  ;;  %p2412_p6 = scmp.lt.u32.totalorder %s2410_s12, %s2405_s14 }
  0x50   : > { %p2414_p3 = scmp.lt.u32.totalorder %s2405_s14, %s2720_s29 }
  0x51   : > { %p2408_p2 = pnand %p2407_p0, %p2406_p12  ;;  %p2413_p10 = por %p2412_p6, %p2411_p13 }
  0x53   : > { %p2409_p1 = pneg %p2408_p2  ;;  %p2415_p7 = por %p2414_p3, %p2413_p10 }
  0x55   : > { %p2416_p9 = pnand %p2415_p7, %p2409_p1 }
  0x57   : > { %2419 = shalt.err (!%p2416_p9)
}
  0x58   : > { %s2420_s22 = scalar_lea.vmem %s2722_s11, 128  ;;  %s2511_s30 = smov [#allocation3]  }
  0x59   : > { %p2421_p12 = scmp.ne.s32.totalorder %s2722_s11, %s2420_s22  ;;  %s2425_s26 = sshll.u32 %s2511_s30, 4  ;;  %s2426_s26 = int_to_ptr.vmem [resolvable:$false] %s2425_s26 }
  0x5a   : > { %s2427_s13 = scalar_lea.vmem %s2426_s26, 256  ;;  %p2428_p4 = scmp.lt.s32.totalorder %s2722_s11, %s2426_s26 }
  0x5b   : > { %p2423_p2 = pnand %p2421_p12, %p2407_p0  ;;  %p2429_p13 = scmp.lt.s32.totalorder %s2427_s13, %s2420_s22 }
  0x5d   : > { %p2424_p5 = pneg %p2423_p2  ;;  %p2430_p6 = por %p2429_p13, %p2428_p4 }
  0x5f   : > { %p2431_p10 = pnand %p2430_p6, %p2424_p5 }
  0x61   : > { %2434 = shalt.err (!%p2431_p10)
}
  0x62   : > { %2248 = dma.hbm_to_vmem [thread:$0]  (!%p2724_p11), %s2720_s29, 128, %s2722_s11, %s372_s28  }
  0x63   : > { %397 = sbr.rel (%p2627_p8) target bundleno = 2632 (0xa48), region = 64  ;;  %s2756_s14 = sand.u32 (!%p2627_p8), 1, %s2497_s18  }
  0x64   : > { %s1969_s12 = sshll.u32 (!%p2627_p8), %s2756_s14, 3  ;;  %s400_s27 = scalar_lea.sflag (!%p2627_p8), [#allocation4], %s2756_s14 }
  0x65   : > { %s2760_s22 = scalar_lea.vmem (!%p2627_p8), [#allocation3], %s1969_s12  ;;  %p3021_p4 = scmp.ne.s32.totalorder (!%p2627_p8), %s3012_s23, 0 }
  0x6a   : > { %2480 = dma.done.wait (%p3021_p4), %s400_s27, 128  }
  0x6b   : > { %2482 = vsyncadd (%p3021_p4), %s400_s27, 4294967168  ;;  %p3022_p5 = scmp.eq.s32.totalorder %s2608_s21, 0 }
  0x6d   : > { %2484 = dma.done.wait (%p3022_p5), [#allocation7], 1024   ;;  %p3023_p8 = pmov %p3022_p5 }
  0x6e   : > { %s1973_s25 = sshll.u32 %s2608_s21, 1  ;;  %vm486_vm0 = vcmask 261120   ;;  %v478_v0 = vld [vmem:[%s2994_s3] sm:$0xff]  ;;  %v479_v1 = vld [vmem:[%s2994_s3 + $0x8] sm:$0xff]  ;;  %v480_v2 = vld [vmem:[%s2994_s3 + $0x10] sm:$0xff]  ;;  %v2512_v11 = vmov 0.0|0.0  }
  0x6f   : > { %2486 = vsyncadd (%p3023_p8), [#allocation7], 4294966272  ;;  %p459_p11 = scmp.lt.s32.totalorder %s1973_s25, 3  ;;  %v2180_v3 = vpack.c.bf16 %v479_v1, %v478_v0  ;;  %v481_v4 = vld [vmem:[%s2994_s3 + $0x18] sm:$0xff]  ;;  %v568_v7 = vld [vmem:[%s2995_s4] sm:$0xff]  ;;  %vm2513_vm1 = vmmov 0  }
  0x70   : > { %v2184_v6 = vpack.c.bf16 %v481_v4, %v480_v2  ;;  %v569_v8 = vld [vmem:[%s2995_s4 + $0x8] sm:$0xff]  ;;  %v570_v12 = vld [vmem:[%s2995_s4 + $0x10] sm:$0xff]  ;;  %v571_v13 = vld [vmem:[%s2995_s4 + $0x18] sm:$0xff]  ;;  %v2514_v15 = vmov 0.0   ;;  %vm653_vm2 = vcmask 64512   ;;  %s2515_s27 = smov 120  }
  0x71   : > { %s3035_s25 = smov (!%p459_p11, %s1973_s25), 3  ;;  %2181 = vmatprep.subr.bf16.mxu1 %v2180_v3  ;;  %v2189_v10 = vpack.c.bf16 %v569_v8, %v568_v7  ;;  %v2192_v14 = vpack.c.bf16 %v571_v13, %v570_v12  ;;  %v470_v16 = vld [vmem:[%s2760_s22] sm:$0xff]  ;;  %v1975_v17 = vld [vmem:[%s2999_s8] ss:$0 sm:$0xff]  ;;  %s2516_s22 = smov 112   ;;  %vm1057_vm3 = vcmask 130112  }
  0x72   : > { %s1974_s29 = sshll.u32 %s3035_s25, 3  ;;  %2183 = vmatpush3.bf16.msra.mxu1 %v2180_v3  ;;  %v1978_v22 = vld [vmem:[%s3000_s9] ss:$0 sm:$0xff]  ;;  %s2517_s11 = smov 104   ;;  %vm1263_vm4 = vcmask 195712   ;;  %vm1469_vm5 = vcmask 261312  }
  0x73   : > { %s462_s28 = scalar_lea.vmem %s2991_s0, %s1974_s29  ;;  %2185 = vmatprep.subr.bf16.mxu1 %v2184_v6  ;;  %p464_p0 = scmp.lt.s32.totalorder %s2608_s21, 1  ;;  %vm1710_vm6 = vcmask 523264  }
  0x74   : > { %v2786_v5 = vld [vmem:[%s462_s28] sm:$0xff]  ;;  %v2796_v9 = vld [vmem:[%s462_s28 + $0x8] sm:$0xff]  ;;  %s2518_s23 = smov 88   ;;  %s2519_s13 = smov 96  }
  0x75   : > { %2085 = vmatprep.mubr.msk.f32.mxu1 %vm486_vm0, %v2786_v5  ;;  %s465_s17 = scalar_select %p464_p0, %s2608_s21, 1 }
  0x76   : > { %2187 = vmatpush3.bf16.msra.mxu1 %v2184_v6  ;;  %s2520_s28 = smov 80   ;;  %s2521_s12 = smov 72  }
  0x77   : > { %2188 = vmatprep.subr.bf16.mxu1 %v2512_v11  ;;  %s466_s26 = scalar_lea.vmem %s2993_s2, %s465_s17  ;;  %s2523_s25 = smov 16  }
  0x78   : > { %v1983_v35 = vld [vmem:[%s466_s26] ss:$0 sm:$0xff]  ;;  %s2524_s29 = smov 24   ;;  %s1972_s17 = sshll.u32 %s2756_s14, 4 }
  0x79   : > { %2086 = vmatmul.mubr.msk.f32.vlgmr.msra.gmra.mrb[0].mxu1 %vm486_vm0, %v2796_v9  ;;  %p3025_p3 = scmp.ne.s32.totalorder %s3018_s15, 0  ;;  %s2525_s30 = smov [#allocation9]  }
  0x7a   : > { %2190 = vmatpush3.bf16.msra.mxu1 %v2189_v10  ;;  %2096 = vmatprep.mubr.msk.f32.mxu1 %vm2513_vm1, %v2514_v15  ;;  %s2439_s1 = sshll.u32 %s2525_s30, 4  ;;  %s2440_s1 = int_to_ptr.vmem [resolvable:$false] %s2439_s1 }
  0x7b   : > { %2191 = vmatprep.subr.bf16.mxu1 %v2512_v11  ;;  %s2441_s26 = scalar_lea.vmem %s2440_s1, 512 }
  0x7e   : > { %2193 = vmatpush3.bf16.msra.mxu1 %v2192_v14 }
  0x81   : > { %2097 = vmatmul.mubr.msk.f32.vlgmr.msra.gmra.mrb[2].mxu1 %vm486_vm0, %v470_v16 }
 0x14c   : > { %v2087_v18 = vpop.f32.mrb[0].mxu1 }
 0x14d   : > { %v565_v19 = vadd.f32 %v2087_v18, %v1975_v17  ;;  %v559_v20 = vpop.f32.mrb[1].mxu1 }
 0x14e   : > { %v560_v21 = vadd.f32 %v1975_v17, %v559_v20 }
 0x14f   : > { %856 = vrot.lane.b32.xlu1 %v565_v19, %s2515_s27 }
 0x150   : > { %854 = vrot.lane.b32.xlu0 %v560_v21, %s2515_s27  ;;  %2101 = vmatprep.mubr.msk.f32.mxu0 %vm653_vm2, %v560_v21 }
 0x154   : > { %v648_v23 = vpop.f32.mrb[2].mxu1 }
 0x155   : > { %v2815_v24 = vadd.f32 %v1978_v22, %v648_v23  ;;  %v2098_v25 = vpop.f32.mrb[3].mxu1 }
 0x157   : > { %1064 = vrot.lane.b32.xlu1 %v2815_v24, %s2516_s22  ;;  %2099 = vmatprep.subr.msk.mxu0 %vm653_vm2, %v2815_v24 }
 0x158   : > { %858 = vrot.lane.b32.xlu0 %v2815_v24, %s2515_s27  ;;  %2100 = vmatpush3.xpose.msk.msra.mxu0 %vm653_vm2, %v2815_v24  ;;  %s2522_s27 = smov 8  }
 0x15b   : > { %1062 = vrot.lane.b32.xlu1 %v565_v19, %s2516_s22  ;;  %2102 = vmatmul.mubr.msk.f32.vlgmr.msra.gmra.mrb[0].mxu0 %vm653_vm2, %v565_v19 }
 0x15c   : > { %1060 = vrot.lane.b32.xlu0 %v560_v21, %s2516_s22  ;;  %s3024_s22 = sld [smem:[#allocation16_spill]] }
 0x15f   : > { %1266 = vrot.lane.b32.xlu1 %v560_v21, %s2517_s11 }
 0x160   : > { %1270 = vrot.lane.b32.xlu0 %v2815_v24, %s2517_s11 }
 0x164   : > { %1268 = vrot.lane.b32.xlu0 %v565_v19, %s2517_s11 }
 0x1c1   : > { %v857_v27 = vpop.permute.xlu1 %856 }
 0x1c2   : > { %v855_v26 = vpop.permute.xlu0 %854 }
 0x1c3   : > { %2111 = vmatprep.mubr.msk.f32.mxu0 %vm653_vm2, %v855_v26 }
 0x1c9   : > { %v1065_v28 = vpop.permute.xlu1 %1064 }
 0x1ca   : > { %v859_v29 = vpop.permute.xlu0 %858 }
 0x1cb   : > { %2109 = vmatprep.subr.msk.mxu0 %vm653_vm2, %v859_v29 }
 0x1cc   : > { %2110 = vmatpush3.xpose.msk.msra.mxu0 %vm653_vm2, %v859_v29 }
 0x1cd   : > { %2119 = vmatprep.subr.msk.mxu0 %vm653_vm2, %v1065_v28  ;;  %v1063_v30 = vpop.permute.xlu1 %1062 }
 0x1ce   : > { %v1061_v31 = vpop.permute.xlu0 %1060 }
 0x1cf   : > { %2112 = vmatmul.mubr.msk.f32.vlgmr.msra.gmra.mrb[2].mxu0 %vm653_vm2, %v857_v27 }
 0x1d0   : > { %2120 = vmatpush3.xpose.msk.msra.mxu0 %vm653_vm2, %v1065_v28  ;;  %2121 = vmatprep.mubr.msk.f32.mxu0 %vm653_vm2, %v1061_v31 }
 0x1d1   : > { %v1267_v32 = vpop.permute.xlu1 %1266 }
 0x1d2   : > { %v1271_v33 = vpop.permute.xlu0 %1270 }
 0x1d3   : > { %2122 = vmatmul.mubr.msk.f32.vlgmr.msra.gmra.mrb[4].mxu0 %vm653_vm2, %v1063_v30  ;;  %2129 = vmatprep.subr.msk.mxu0 %vm653_vm2, %v1271_v33 }
 0x1d4   : > { %2130 = vmatpush3.xpose.msk.msra.mxu0 %vm653_vm2, %v1271_v33  ;;  %2131 = vmatprep.mubr.msk.f32.mxu0 %vm653_vm2, %v1267_v32 }
 0x1d6   : > { %v1269_v34 = vpop.permute.xlu0 %1268 }
 0x1d7   : > { %2132 = vmatmul.mubr.msk.f32.vlgmr.msra.gmra.mrb[6].mxu0 %vm653_vm2, %v1269_v34 }
 0x22e   : > { %v2103_v36 = vpop.f32.mrb[0].mxu0 }
 0x22f   : > { %v745_v37 = vsub.f32 %v2103_v36, %v1983_v35  ;;  %v729_v38 = vpop.f32.mrb[1].mxu0 }
 0x230   : > { %v744_v39 = vsub.f32 %v729_v38, %v1983_v35 }
 0x231   : > { %v749_v40 = vsel %vm653_vm2, %v745_v37, -inf }
 0x232   : > { %750 = vmax.xlane.f32.xlu0 %v749_v40  ;;  %v746_v41 = vsel %vm653_vm2, %v744_v39, -inf }
 0x233   : > { %747 = vmax.xlane.f32.xlu1 %v746_v41 }
 0x2a2   : > { %v2113_v42 = vpop.f32.mrb[2].mxu0 }
 0x2a3   : > { %v942_v43 = vsub.f32 %v2113_v42, %v1983_v35  ;;  %v932_v44 = vpop.f32.mrb[3].mxu0 }
 0x2a4   : > { %v941_v45 = vsub.f32 %v932_v44, %v1983_v35 }
 0x2a5   : > { %v946_v46 = vsel %vm653_vm2, %v942_v43, -inf }
 0x2a6   : > { %v2123_v47 = vpop.f32.mrb[4].mxu0  ;;  %947 = vmax.xlane.f32.xlu1 %v946_v46  ;;  %v943_v48 = vsel %vm653_vm2, %v941_v45, -inf }
 0x2a7   : > { %v1148_v49 = vsub.f32 %v2123_v47, %v1983_v35  ;;  %v1138_v50 = vpop.f32.mrb[5].mxu0  ;;  %944 = vmax.xlane.f32.xlu0 %v943_v48 }
 0x2a8   : > { %v1147_v51 = vsub.f32 %v1138_v50, %v1983_v35 }
 0x2a9   : > { %v1152_v52 = vsel %vm653_vm2, %v1148_v49, -inf }
 0x2aa   : > { %v2133_v53 = vpop.f32.mrb[6].mxu0  ;;  %1153 = vmax.xlane.f32.xlu1 %v1152_v52  ;;  %v1149_v54 = vsel %vm653_vm2, %v1147_v51, -inf }
 0x2ab   : > { %v1354_v55 = vsub.f32 %v2133_v53, %v1983_v35  ;;  %v1344_v56 = vpop.f32.mrb[7].mxu0  ;;  %1150 = vmax.xlane.f32.xlu0 %v1149_v54 }
 0x2ac   : > { %v1353_v57 = vsub.f32 %v1344_v56, %v1983_v35 }
 0x2ad   : > { %v1358_v58 = vsel %vm653_vm2, %v1354_v55, -inf }
 0x2ae   : > { %1359 = vmax.xlane.f32.xlu1 %v1358_v58  ;;  %v1355_v59 = vsel %vm653_vm2, %v1353_v57, -inf }
 0x2af   : > { %1356 = vmax.xlane.f32.xlu0 %v1355_v59 }
 0x2bf   : > { %965 = vrot.lane.b32.xlu1 %v2815_v24, %s2518_s23  ;;  %v751_v60 = vpop.xlane.xlu0 %750 }
 0x2c0   : > { %v748_v61 = vpop.xlane.xlu1 %747  ;;  %v753_v62 = vsub.f32 %v745_v37, %v751_v60 }
 0x2c1   : > { %v752_v63 = vsub.f32 %v744_v39, %v748_v61 }
 0x2c2   : > { %v756_v0 = vmul.f32 1.442695, %v753_v62 }
 0x2c3   : > { %v754_v1 = vmul.f32 1.442695, %v752_v63 }
 0x2c4   : > { %2309 = vpow2.f32 %v756_v0 }
 0x2c5   : > { %768 = vrot.lane.b32.xlu0 %v2815_v24, %s2519_s13  ;;  %2311 = vpow2.f32 %v754_v1  ;;  %s2019_s13 = sshll.u32 %s2608_s21, 8  ;;  %s1835_s21 = scalar_lea.sflag [#allocation5], %s2756_s14 }
 0x2c6   : > { %s2942_s11 = scalar_lea.hbm %s3024_s22, %s2019_s13 }
 0x2ce   : > { %v2852_v2 = vpop.eup %2309 }
 0x2cf   : > { %v2312_v3 = vpop.eup %2311  ;;  %v761_v4 = vsel %vm653_vm2, %v2852_v2, 0.0 }
 0x2d0   : > { %v758_v6 = vsel %vm653_vm2, %v2312_v3, 0.0 }
 0x2e3   : > { %762 = vadd.xlane.f32.xlu1 %v761_v4  ;;  %v1474_v4 = vld [vmem:[#allocation6] sm:$0xff] }
 0x2e4   : > { %759 = vadd.xlane.f32.xlu0 %v758_v6  ;;  %v1475_v6 = vld [vmem:[#allocation6 + $0x8] sm:$0xff] }
 0x333   : > { %v948_v7 = vpop.xlane.xlu1 %947 }
 0x334   : > { %v950_v8 = vsub.f32 %v942_v43, %v948_v7  ;;  %v945_v10 = vpop.xlane.xlu0 %944  ;;  %v2194_v7 = vpack.c.bf16 %v1475_v6, %v1474_v4  ;;  %v2005_v6 = vld [vmem:[%s2999_s8 + $0x3] ss:$0 sm:$0xff] }
 0x335   : > { %v949_v11 = vsub.f32 %v941_v45, %v945_v10  ;;  %v1477_v10 = vld [vmem:[#allocation6 + $0x18] sm:$0xff] }
 0x336   : > { %v953_v12 = vmul.f32 1.442695, %v950_v8  ;;  %v1476_v8 = vld [vmem:[#allocation6 + $0x10] sm:$0xff]  ;;  %2195 = vmatprep.subr.bf16.mxu0 %v2194_v7 }
 0x337   : > { %v951_v13 = vmul.f32 1.442695, %v949_v11  ;;  %v1154_v14 = vpop.xlane.xlu1 %1153  ;;  %v2198_v11 = vpack.c.bf16 %v1477_v10, %v1476_v8  ;;  %2197 = vmatpush3.bf16.msra.mxu0 %v2194_v7 }
 0x338   : > { %2313 = vpow2.f32 %v953_v12  ;;  %v1156_v15 = vsub.f32 %v1148_v49, %v1154_v14  ;;  %v1151_v16 = vpop.xlane.xlu0 %1150 }
 0x339   : > { %2315 = vpow2.f32 %v951_v13  ;;  %v1155_v17 = vsub.f32 %v1147_v51, %v1151_v16  ;;  %2199 = vmatprep.subr.bf16.mxu0 %v2198_v11 }
 0x33a   : > { %v1159_v18 = vmul.f32 1.442695, %v1156_v15 }
 0x33b   : > { %v1157_v19 = vmul.f32 1.442695, %v1155_v17  ;;  %v1360_v20 = vpop.xlane.xlu1 %1359  ;;  %2201 = vmatpush3.bf16.msra.mxu0 %v2198_v11 }
 0x33c   : > { %2317 = vpow2.f32 %v1159_v18  ;;  %v1362_v21 = vsub.f32 %v1354_v55, %v1360_v20  ;;  %v1357_v22 = vpop.xlane.xlu0 %1356 }
 0x33d   : > { %2319 = vpow2.f32 %v1157_v19  ;;  %v1361_v23 = vsub.f32 %v1353_v57, %v1357_v22 }
 0x33e   : > { %v1365_v25 = vmul.f32 1.442695, %v1362_v21 }
 0x33f   : > { %v1363_v26 = vmul.f32 1.442695, %v1361_v23  ;;  %v966_v29 = vpop.permute.xlu1 %965 }
 0x340   : > { %2321 = vpow2.f32 %v1365_v25  ;;  %v769_v27 = vpop.permute.xlu0 %768 }
 0x341   : > { %2323 = vpow2.f32 %v1363_v26  ;;  %2104 = vmatprep.subr.mxu1 %v769_v27 }
 0x342   : > { %v2314_v28 = vpop.eup %2313  ;;  %2105 = vmatpush3.msra.mxu1 %v769_v27  ;;  %v2001_v27 = vld [vmem:[%s2999_s8 + $0x1] ss:$0 sm:$0xff] }
 0x343   : > { %v2316_v30 = vpop.eup %2315  ;;  %2114 = vmatprep.subr.mxu1 %v966_v29  ;;  %v958_v31 = vsel %vm653_vm2, %v2314_v28, 0.0 }
 0x344   : > { %959 = vadd.xlane.f32.xlu1 %v958_v31  ;;  %v955_v32 = vsel %vm653_vm2, %v2316_v30, 0.0 }
 0x345   : > { %956 = vadd.xlane.f32.xlu0 %v955_v32 }
 0x346   : > { %v2318_v33 = vpop.eup %2317 }
 0x347   : > { %v2320_v34 = vpop.eup %2319  ;;  %v1164_v35 = vsel %vm653_vm2, %v2318_v33, 0.0 }
 0x348   : > { %1165 = vadd.xlane.f32.xlu1 %v1164_v35  ;;  %v1161_v36 = vsel %vm653_vm2, %v2320_v34, 0.0 }
 0x349   : > { %1162 = vadd.xlane.f32.xlu0 %v1161_v36 }
 0x34a   : > { %v2322_v37 = vpop.eup %2321 }
 0x34b   : > { %v2324_v38 = vpop.eup %2323  ;;  %v1370_v39 = vsel %vm653_vm2, %v2322_v37, 0.0 }
 0x34c   : > { %1371 = vadd.xlane.f32.xlu1 %v1370_v39  ;;  %v1367_v40 = vsel %vm653_vm2, %v2324_v38, 0.0 }
 0x34d   : > { %1368 = vadd.xlane.f32.xlu0 %v1367_v40 }
 0x35d   : > { %1171 = vrot.lane.b32.xlu1 %v2815_v24, %s2520_s28  ;;  %s457_s28 = scalar_lea.vmem [#allocation9], %s1972_s17 }
 0x363   : > { %1377 = vrot.lane.b32.xlu0 %v2815_v24, %s2521_s12  ;;  %s1848_s12 = sshll.u32 %s457_s28, 4  ;;  %s2944_s12 = int_to_ptr.vmem [resolvable:$true] %s1848_s12 }
 0x364   : > { %s2435_s17 = scalar_lea.vmem %s2944_s12, 256  ;;  %p2442_p12 = scmp.lt.s32.totalorder %s2944_s12, %s2440_s1 }
 0x365   : > { %p2436_p1 = scmp.ne.s32.totalorder %s2944_s12, %s2435_s17  ;;  %p2443_p2 = scmp.lt.s32.totalorder %s2441_s26, %s2435_s17 }
 0x367   : > { %p2437_p7 = pnand %p2436_p1, %p3025_p3  ;;  %p2444_p13 = por %p2443_p2, %p2442_p12 }
 0x369   : > { %p2438_p9 = pneg %p2437_p7 }
 0x36b   : > { %p2445_p6 = pnand %p2444_p13, %p2438_p9 }
 0x370   : > { %v763_v41 = vpop.xlane.xlu1 %762 }
 0x371   : > { %2325 = vrcp.f32 %v763_v41  ;;  %v760_v42 = vpop.xlane.xlu0 %759 }
 0x372   : > { %2327 = vrcp.f32 %v760_v42 }
 0x37b   : > { %v2326_v43 = vpop.eup %2325 }
 0x37c   : > { %v2328_v44 = vpop.eup %2327  ;;  %v767_v46 = vmul.f32 %v2326_v43, %v2852_v2 }
 0x37d   : > { %v766_v45 = vmul.f32 %v2328_v44, %v2312_v3 }
 0x37f   : > { %2106 = vmatprep.mubr.msk.f32.mxu1 %vm653_vm2, %v766_v45  ;;  %v1605_v45 = vld [vmem:[#allocation8 + $0x8] sm:$0xff] }
 0x380   : > { %2107 = vmatmul.mubr.msk.f32.vlgmr.msra.gmra.mrb[4].mxu1 %vm653_vm2, %v767_v46 }
 0x381   : > { %2115 = vmatpush3.msra.mxu1 %v966_v29 }
 0x3d1   : > { %v960_v47 = vpop.xlane.xlu1 %959 }
 0x3d2   : > { %2329 = vrcp.f32 %v960_v47  ;;  %v957_v48 = vpop.xlane.xlu0 %956  ;;  %v1606_v47 = vld [vmem:[#allocation8 + $0x10] sm:$0xff] }
 0x3d3   : > { %2331 = vrcp.f32 %v957_v48  ;;  %v1607_v48 = vld [vmem:[#allocation8 + $0x18] sm:$0xff] }
 0x3d5   : > { %v1166_v49 = vpop.xlane.xlu1 %1165 }
 0x3d6   : > { %2333 = vrcp.f32 %v1166_v49  ;;  %v1163_v24 = vpop.xlane.xlu0 %1162  ;;  %v2206_v49 = vpack.c.bf16 %v1607_v48, %v1606_v47  ;;  %v2012_v47 = vld [vmem:[%s2999_s8 + $0x5] ss:$0 sm:$0xff] }
 0x3d7   : > { %2335 = vrcp.f32 %v1163_v24  ;;  %v1698_v24 = vld [vmem:[%s2998_s7] sm:$0xff] }
 0x3d9   : > { %v1372_v50 = vpop.xlane.xlu1 %1371 }
 0x3da   : > { %2337 = vrcp.f32 %v1372_v50  ;;  %v1369_v51 = vpop.xlane.xlu0 %1368  ;;  %v1699_v50 = vld [vmem:[%s2998_s7 + $0x8] sm:$0xff] }
 0x3db   : > { %2339 = vrcp.f32 %v1369_v51  ;;  %v1700_v51 = vld [vmem:[%s2998_s7 + $0x10] sm:$0xff] }
 0x3dc   : > { %v2330_v52 = vpop.eup %2329 }
 0x3dd   : > { %v2332_v53 = vpop.eup %2331  ;;  %v1172_v54 = vpop.permute.xlu1 %1171  ;;  %v964_v56 = vmul.f32 %v2330_v52, %v2314_v28  ;;  %v2210_v52 = vpack.c.bf16 %v1699_v50, %v1698_v24  ;;  %v2013_v24 = vld [vmem:[%s2999_s8 + $0x6] ss:$0 sm:$0xff] }
 0x3de   : > { %2124 = vmatprep.subr.mxu1 %v1172_v54  ;;  %v963_v55 = vmul.f32 %v2332_v53, %v2316_v30  ;;  %v1378_v59 = vpop.permute.xlu0 %1377  ;;  %v1701_v53 = vld [vmem:[%s2998_s7 + $0x18] sm:$0xff] }
 0x3df   : > { %2211 = vmatprep.subr.bf16.mxu0 %v2210_v52 }
 0x3e0   : > { %v2334_v57 = vpop.eup %2333  ;;  %2116 = vmatprep.mubr.msk.f32.mxu1 %vm653_vm2, %v963_v55  ;;  %v1702_v55 = vld [vmem:[%s2998_s7 + $0x20] sm:$0xff] }
 0x3e1   : > { %v2336_v58 = vpop.eup %2335  ;;  %2117 = vmatmul.mubr.msk.f32.vlgmr.msra.gmra.mrb[6].mxu1 %vm653_vm2, %v964_v56  ;;  %v1170_v61 = vmul.f32 %v2334_v57, %v2318_v33  ;;  %v1703_v56 = vld [vmem:[%s2998_s7 + $0x28] sm:$0xff] }
 0x3e2   : > { %2125 = vmatpush3.msra.mxu1 %v1172_v54  ;;  %v1169_v60 = vmul.f32 %v2336_v58, %v2320_v34  ;;  %v2214_v54 = vpack.c.bf16 %v1701_v53, %v1700_v51  ;;  %v2218_v57 = vpack.c.bf16 %v1703_v56, %v1702_v55 }
 0x3e3   : > { %2134 = vmatprep.subr.mxu1 %v1378_v59 }
 0x3e4   : > { %v2338_v62 = vpop.eup %2337  ;;  %2126 = vmatprep.mubr.msk.f32.mxu1 %vm653_vm2, %v1169_v60 }
 0x3e5   : > { %v2340_v63 = vpop.eup %2339  ;;  %2127 = vmatmul.mubr.msk.f32.vlgmr.msra.gmra.mrb[8].mxu1 %vm653_vm2, %v1170_v61  ;;  %v1376_v1 = vmul.f32 %v2338_v62, %v2322_v37 }
 0x3e6   : > { %2135 = vmatpush3.msra.mxu1 %v1378_v59  ;;  %v1375_v0 = vmul.f32 %v2340_v63, %v2324_v38 }
 0x3e8   : > { %2136 = vmatprep.mubr.msk.f32.mxu1 %vm653_vm2, %v1375_v0 }
 0x3e9   : > { %2137 = vmatmul.mubr.msk.f32.vlgmr.msra.gmra.mrb[10].mxu1 %vm653_vm2, %v1376_v1  ;;  %v2004_v1 = vld [vmem:[%s2999_s8 + $0x2] ss:$0 sm:$0xff] }
 0x453   : > { %v2108_v2 = vpop.f32.mrb[4].mxu1 }
 0x454   : > { %853 = vst.msk [vmem:[#allocation2 + $0x8] sm:$0xff] %vm653_vm2, %v2108_v2  ;;  %v843_v3 = vpop.f32.mrb[5].mxu1 }
 0x455   : > { %852 = vst.msk [vmem:[#allocation2] sm:$0xff] %vm653_vm2, %v843_v3 }
 0x4b4   : > { %v2118_v12 = vpop.f32.mrb[6].mxu1 }
 0x4b5   : > { %1053 = vrot.lane.b32.xlu0 %v2118_v12, %s2522_s27  ;;  %v1040_v13 = vpop.f32.mrb[7].mxu1  ;;  %v1704_v12 = vld [vmem:[%s2998_s7 + $0x30] sm:$0xff] }
 0x4b6   : > { %1051 = vrot.lane.b32.xlu1 %v1040_v13, %s2522_s27  ;;  %v1705_v13 = vld [vmem:[%s2998_s7 + $0x38] sm:$0xff] }
 0x4b8   : > { %v2128_v14 = vpop.f32.mrb[8].mxu1 }
 0x4b9   : > { %1259 = vrot.lane.b32.xlu0 %v2128_v14, %s2523_s25  ;;  %v1246_v15 = vpop.f32.mrb[9].mxu1  ;;  %v2222_v14 = vpack.c.bf16 %v1705_v13, %v1704_v12 }
 0x4ba   : > { %1257 = vrot.lane.b32.xlu1 %v1246_v15, %s2523_s25  ;;  %v2006_v15 = vld [vmem:[%s3001_s10] ss:$0 sm:$0xff] }
 0x4bc   : > { %v2138_v16 = vpop.f32.mrb[10].mxu1 }
 0x4bd   : > { %1465 = vrot.lane.b32.xlu0 %v2138_v16, %s2524_s29  ;;  %v1452_v17 = vpop.f32.mrb[11].mxu1 }
 0x4be   : > { %1463 = vrot.lane.b32.xlu1 %v1452_v17, %s2524_s29 }
 0x527   : > { %v1054_v18 = vpop.permute.xlu0 %1053 }
 0x528   : > { %1059 = vst.msk [vmem:[#allocation2 + $0x8] sm:$0xff] %vm1057_vm3, %v1054_v18  ;;  %v1052_v19 = vpop.permute.xlu1 %1051 }
 0x529   : > { %1058 = vst.msk [vmem:[#allocation2] sm:$0xff] %vm1057_vm3, %v1052_v19 }
 0x52b   : > { %v1260_v20 = vpop.permute.xlu0 %1259 }
 0x52c   : > { %1265 = vst.msk [vmem:[#allocation2 + $0x8] sm:$0xff] %vm1263_vm4, %v1260_v20  ;;  %v1258_v21 = vpop.permute.xlu1 %1257 }
 0x52d   : > { %1264 = vst.msk [vmem:[#allocation2] sm:$0xff] %vm1263_vm4, %v1258_v21 }
 0x52f   : > { %v1466_v22 = vpop.permute.xlu0 %1465 }
 0x530   : > { %1471 = vst.msk [vmem:[#allocation2 + $0x8] sm:$0xff] %vm1469_vm5, %v1466_v22  ;;  %v1464_v23 = vpop.permute.xlu1 %1463  ;;  %v2009_v22 = vld [vmem:[%s2999_s8 + $0x4] ss:$0 sm:$0xff] }
 0x531   : > { %1470 = vst.msk [vmem:[#allocation2] sm:$0xff] %vm1469_vm5, %v1464_v23 }
 0x537   : > { %v1473_v26 = vld [vmem:[#allocation2 + $0x8] sm:$0xff] }
 0x538   : > { %v1472_v25 = vld [vmem:[#allocation2] sm:$0xff] }
 0x539   : > { %2147 = vmatprep.mubr.msk.f32.mxu0 %vm486_vm0, %v1472_v25 }
 0x53a   : > { %2148 = vmatmul.mubr.msk.f32.vlgmr.msra.gmra.mrb[8].mxu0 %vm486_vm0, %v1473_v26 }
 0x53b   : > { %2213 = vmatpush3.bf16.msra.mxu0 %v2210_v52 }
 0x53c   : > { %2215 = vmatprep.subr.bf16.mxu0 %v2214_v54 }
 0x53f   : > { %2217 = vmatpush3.bf16.msra.mxu0 %v2214_v54 }
 0x540   : > { %2219 = vmatprep.subr.bf16.mxu0 %v2218_v57 }
 0x543   : > { %2221 = vmatpush3.bf16.msra.mxu0 %v2218_v57 }
 0x544   : > { %2223 = vmatprep.subr.bf16.mxu0 %v2222_v14 }
 0x547   : > { %2225 = vmatpush3.bf16.msra.mxu0 %v2222_v14 }
 0x60d   : > { %v2149_v28 = vpop.f32.mrb[8].mxu0 }
 0x60e   : > { %v1560_v29 = vadd.f32 %v2149_v28, %v2001_v27  ;;  %v1554_v30 = vpop.f32.mrb[9].mxu0 }
 0x60f   : > { %v1555_v31 = vadd.f32 %v2001_v27, %v1554_v30 }
 0x610   : > { %v1564_v32 = vadd.f32 %v1560_v29, %v2796_v9 }
 0x611   : > { %v1563_v33 = vadd.f32 %v1555_v31, %v2786_v5  ;;  %v1604_v5 = vld [vmem:[#allocation8] sm:$0xff] }
 0x612   : > { %v1568_v34 = vsel %vm486_vm0, %v1564_v32, 0.0  ;;  %v2202_v46 = vpack.c.bf16 %v1605_v45, %v1604_v5 }
 0x613   : > { %1569 = vadd.xlane.f32.xlu0 %v1568_v34  ;;  %v1565_v35 = vsel %vm486_vm0, %v1563_v33, 0.0 }
 0x614   : > { %1566 = vadd.xlane.f32.xlu1 %v1565_v35  ;;  %2203 = vmatprep.subr.bf16.mxu1 %v2202_v46 }
 0x615   : > { %2205 = vmatpush3.bf16.msra.mxu1 %v2202_v46 }
 0x616   : > { %2207 = vmatprep.subr.bf16.mxu1 %v2206_v49 }
 0x619   : > { %2209 = vmatpush3.bf16.msra.mxu1 %v2206_v49 }
 0x6a0   : > { %v1570_v36 = vpop.xlane.xlu0 %1569 }
 0x6a1   : > { %v1573_v37 = vmul.f32 0.03125, %v1570_v36  ;;  %v1567_v38 = vpop.xlane.xlu1 %1566 }
 0x6a2   : > { %v1572_v39 = vmul.f32 0.03125, %v1567_v38 }
 0x6a3   : > { %v1575_v40 = vsub.f32 %v1564_v32, %v1573_v37 }
 0x6a4   : > { %v1574_v41 = vsub.f32 %v1563_v33, %v1572_v39 }
 0x6a5   : > { %v1577_v42 = vmul.f32 %v1575_v40, %v1575_v40 }
 0x6a6   : > { %v1576_v43 = vmul.f32 %v1574_v41, %v1574_v41 }
 0x6a7   : > { %v1581_v44 = vsel %vm486_vm0, %v1577_v42, 0.0 }
 0x6a8   : > { %1582 = vadd.xlane.f32.xlu1 %v1581_v44  ;;  %v1578_v9 = vsel %vm486_vm0, %v1576_v43, 0.0 }
 0x6a9   : > { %1579 = vadd.xlane.f32.xlu0 %v1578_v9 }
 0x735   : > { %v1583_v58 = vpop.xlane.xlu1 %1582 }
 0x736   : > { %v1585_v59 = vmul.f32 0.03125, %v1583_v58  ;;  %v1580_v60 = vpop.xlane.xlu0 %1579 }
 0x737   : > { %v1584_v61 = vmul.f32 0.03125, %v1580_v60 }
 0x738   : > { %v1587_v62 = vadd.f32 1e-05, %v1585_v59 }
 0x739   : > { %v1586_v63 = vadd.f32 1e-05, %v1584_v61 }
 0x73a   : > { %2341 = vrsqrt.f32 %v1587_v62 }
 0x73b   : > { %2343 = vrsqrt.f32 %v1586_v63 }
 0x744   : > { %v2342_v0 = vpop.eup %2341 }
 0x745   : > { %v2344_v2 = vpop.eup %2343  ;;  %v1591_v3 = vmul.f32 %v2342_v0, %v1575_v40 }
 0x746   : > { %v1590_v4 = vmul.f32 %v2344_v2, %v1574_v41 }
 0x747   : > { %v1597_v7 = vmul.f32 %v2004_v1, %v1591_v3 }
 0x748   : > { %v1596_v8 = vmul.f32 %v2004_v1, %v1590_v4 }
 0x749   : > { %v1603_v11 = vadd.f32 %v2005_v6, %v1597_v7 }
 0x74a   : > { %v1602_v10 = vadd.f32 %v2005_v6, %v1596_v8 }
 0x74c   : > { %2158 = vmatprep.mubr.msk.f32.mxu1 %vm486_vm0, %v1602_v10 }
 0x74d   : > { %2159 = vmatmul.mubr.msk.f32.vlgmr.msra.gmra.mrb[12].mxu1 %vm486_vm0, %v1603_v11 }
 0x820   : > { %v2160_v16 = vpop.f32.mrb[12].mxu1 }
 0x821   : > { %v1693_v17 = vadd.f32 %v2160_v16, %v2006_v15  ;;  %v1687_v18 = vpop.f32.mrb[13].mxu1 }
 0x822   : > { %v1688_v19 = vadd.f32 %v2006_v15, %v1687_v18 }
 0x823   : > { %v1697_v21 = vmax.f32 %v1693_v17, 0.0 }
 0x824   : > { %v1696_v20 = vmax.f32 %v1688_v19, 0.0 }
 0x826   : > { %2177 = vmatprep.mubr.msk.f32.mxu0 %vm1710_vm6, %v1696_v20 }
 0x827   : > { %2178 = vmatmul.mubr.msk.f32.vlgmr.msra.gmra.mrb[10].mxu0 %vm1710_vm6, %v1697_v21 }
 0x8fa   : > { %v2179_v23 = vpop.f32.mrb[10].mxu0 }
 0x8fb   : > { %v1789_v25 = vadd.f32 %v2179_v23, %v2009_v22  ;;  %v1783_v26 = vpop.f32.mrb[11].mxu0 }
 0x8fc   : > { %v1784_v27 = vadd.f32 %v2009_v22, %v1783_v26 }
 0x8fd   : > { %v1793_v28 = vadd.f32 %v1789_v25, %v1603_v11 }
 0x8fe   : > { %v1792_v29 = vadd.f32 %v1784_v27, %v1602_v10 }
 0x8ff   : > { %v1797_v30 = vsel %vm486_vm0, %v1793_v28, 0.0 }
 0x900   : > { %1798 = vadd.xlane.f32.xlu1 %v1797_v30  ;;  %v1794_v31 = vsel %vm486_vm0, %v1792_v29, 0.0 }
 0x901   : > { %1795 = vadd.xlane.f32.xlu0 %v1794_v31 }
 0x98d   : > { %v1799_v32 = vpop.xlane.xlu1 %1798 }
 0x98e   : > { %v1801_v33 = vmul.f32 0.03125, %v1799_v32  ;;  %v1796_v34 = vpop.xlane.xlu0 %1795 }
 0x98f   : > { %v1800_v35 = vmul.f32 0.03125, %v1796_v34 }
 0x990   : > { %v1803_v36 = vsub.f32 %v1793_v28, %v1801_v33 }
 0x991   : > { %v1802_v37 = vsub.f32 %v1792_v29, %v1800_v35 }
 0x992   : > { %v1805_v38 = vmul.f32 %v1803_v36, %v1803_v36 }
 0x993   : > { %v1804_v39 = vmul.f32 %v1802_v37, %v1802_v37 }
 0x994   : > { %v1809_v40 = vsel %vm486_vm0, %v1805_v38, 0.0 }
 0x995   : > { %1810 = vadd.xlane.f32.xlu1 %v1809_v40  ;;  %v1806_v41 = vsel %vm486_vm0, %v1804_v39, 0.0 }
 0x996   : > { %1807 = vadd.xlane.f32.xlu0 %v1806_v41 }
 0xa22   : > { %v1811_v42 = vpop.xlane.xlu1 %1810 }
 0xa23   : > { %v1813_v43 = vmul.f32 0.03125, %v1811_v42  ;;  %v1808_v44 = vpop.xlane.xlu0 %1807 }
 0xa24   : > { %v1812_v9 = vmul.f32 0.03125, %v1808_v44 }
 0xa25   : > { %v1815_v5 = vadd.f32 1e-05, %v1813_v43 }
 0xa26   : > { %v1814_v45 = vadd.f32 1e-05, %v1812_v9 }
 0xa27   : > { %2345 = vrsqrt.f32 %v1815_v5 }
 0xa28   : > { %2347 = vrsqrt.f32 %v1814_v45 }
 0xa31   : > { %v2346_v46 = vpop.eup %2345 }
 0xa32   : > { %v2348_v48 = vpop.eup %2347  ;;  %v1819_v49 = vmul.f32 %v2346_v46, %v1803_v36 }
 0xa33   : > { %v1818_v50 = vmul.f32 %v2348_v48, %v1802_v37 }
 0xa34   : > { %v1825_v51 = vmul.f32 %v2012_v47, %v1819_v49 }
 0xa35   : > { %v1824_v52 = vmul.f32 %v2012_v47, %v1818_v50 }
 0xa36   : > { %v1831_v53 = vadd.f32 %v2013_v24, %v1825_v51 }
 0xa37   : > { %v1830_v54 = vadd.f32 %v2013_v24, %v1824_v52 }
 0xa38   : > { %1833 = vst.msk [vmem:[%s457_s28 + $0x8] sm:$0xff] %vm486_vm0, %v1831_v53 }
 0xa39   : > { %1832 = vst.msk [vmem:[%s457_s28] sm:$0xff] %vm486_vm0, %v1830_v54 }
 0xa3a   : > { %2448 = shalt.err (!%p2445_p6)
}
 0xa3b   : > { %s2449_s23 = scalar_lea.hbm %s2942_s11, 256  ;;  %s2453_s25 = scalar_lea.hbm %s3024_s22, 512 }
 0xa3c   : > { %p2450_p10 = scmp.ne.s32.totalorder %s2942_s11, %s2449_s23  ;;  %p2454_p8 = scmp.lt.u32.totalorder %s2942_s11, %s3024_s22 }
 0xa3d   : > { %p2455_p11 = scmp.lt.u32.totalorder %s2453_s25, %s2449_s23  ;;  %p2457_p1 = scmp.lt.u32.totalorder %s2449_s23, %s2942_s11 }
 0xa3e   : > { %p2451_p4 = pnand %p2450_p10, %p3025_p3 }
 0xa3f   : > { %p2456_p0 = por %p2455_p11, %p2454_p8 }
 0xa40   : > { %p2452_p5 = pneg %p2451_p4 }
 0xa41   : > { %p2458_p7 = por %p2457_p1, %p2456_p0 }
 0xa43   : > { %p2459_p9 = pnand %p2458_p7, %p2452_p5 }
 0xa45   : > { %2462 = shalt.err (!%p2459_p9)
}
 0xa46   : > { %s2526_s17 = smov 128  }
 0xa47   : > { %2236 = dma.vmem_to_hbm [thread:$0]  (%p3025_p3), %s2944_s12, 256, %s2942_s11, %s1835_s21, %s2526_s17, %s2526_s17, %s2522_s27  }
 0xa48 PF: > { %s3026_s1 = sld [smem:[#allocation13_spill]]  ;;  %s3027_s26 = sld [smem:[#allocation14_spill]] }
 0xa49   : > { %p3029_p2 = scmp.ge.s32.totalorder %s2505_s20, 2 }
 0xa4e   : > { %s1863_s13 = sand.u32 1, %s3026_s1   ;;  %p3028_p12 = scmp.ne.s32.totalorder %s3027_s26, 0 }
 0xa4f   : > { %s1864_s23 = scalar_lea.sflag [#allocation5], %s1863_s13 }
 0xa50   : > { %p2250_p13 = pnand %p3029_p2, %p3028_p12 }
 0xa52   : > { %2488 = dma.done.wait (!%p2250_p13), %s1864_s23, 256  }
 0xa53   : > { %2490 = vsyncadd (!%p2250_p13), %s1864_s23, 4294967040  ;;  %p25_p6 = scmp.ge.s32.totalorder %s2697_s24, 4   ;;  %s3030_s17 = smov %s2497_s18 }
 0xa54   : > { %s3031_s18 = smov %s2501_s19  ;;  %s3032_s19 = smov %s2713_s16 }
 0xa55   : > { %s3033_s20 = smov %s2697_s24  ;;  %27 = sbr.rel (!%p25_p6) target bundleno = 9 (0x9), region = 123 }
 0xa5c   :  { %1869 = vsyncpa [#allocation4], 1 }
 0xa5d   :  { %1871 = vsyncpa [#allocation4 + $0x1], 1 }
 0xa5e   :  { %1872 = vsyncpa [#allocation7], 1 }
 0xa5f   :  { %1873 = vsyncpa [#allocation5], 1 }
 0xa60   :  { %1875 = vsyncpa [#allocation5 + $0x1], 1 }

</bundles_post_ra>
